<compile_context>
chip_gen: v6e
topology: v6e:2x2x1
jax: 0.10.0
libtpu: 0.0.40
codegen_flags: <defaults>
</compile_context>

<pallas_src>
import functools
import math

import jax
import jax.numpy as jnp
from jax.experimental import pallas as pl
from jax.experimental.pallas import tpu as pltpu

_EPS = 1e-5
_MAX_FOLD_WIDTH = 1024          # cap on folded row width W = k*C
_VMEM_CAP = 48 * 1024 * 1024    # scoped-VMEM ceiling (v7x has only 64 MiB)


def _round_up(a, m):
    return ((a + m - 1) // m) * m


def _hi_lo_bf16(v):
    """Split f32 v into bf16 (hi, lo) with hi + lo ~= v to ~f32 accuracy."""
    hi = v.astype(jnp.bfloat16)
    lo = (v - hi.astype(jnp.float32)).astype(jnp.bfloat16)
    return hi, lo


def _ln_kernel_dense(x_ref, w_ref, o_ref, *, inv_c):
    """k == 1 path: each kernel row is one normalization row (lane-dense C)."""
    x = x_ref[...].astype(jnp.float32)                       # (T, C)
    mean = jnp.sum(x, axis=-1, keepdims=True) * inv_c
    xc = x - mean
    var = jnp.sum(xc * xc, axis=-1, keepdims=True) * inv_c   # biased variance
    inv = jax.lax.rsqrt(jnp.maximum(var, 0.0) + _EPS)
    o_ref[...] = (x * inv * w_ref[...]).astype(o_ref.dtype)


def _ln_kernel_folded(x_ref, w_ref, e_ref, et_ref, o_ref, *, inv_c):
    """k > 1 path: k original rows folded along lanes (W = k*C).

    e_ref:  (W, k) bf16 0/1 indicator, E[p, j] = 1 iff lane p is in segment j.
    et_ref: (k, W) bf16 transpose (so both matmuls are row-major jnp.dot).
    Segmented sums / broadcasts run on the MXU; the hi/lo bf16 split of the
    data operand keeps them f32-accurate with two single passes each.
    """
    f32 = jnp.float32
    x = x_ref[...].astype(f32)                               # (T, W)
    e = e_ref[...]                                           # (W, k) bf16
    et = et_ref[...]                                         # (k, W) bf16

    def seg_sum(v):                                          # (T, W) -> (T, k)
        hi, lo = _hi_lo_bf16(v)
        return (jnp.dot(hi, e, preferred_element_type=f32)
                + jnp.dot(lo, e, preferred_element_type=f32))

    def seg_bcast(v):                                        # (T, k) -> (T, W)
        hi, lo = _hi_lo_bf16(v)
        return (jnp.dot(hi, et, preferred_element_type=f32)
                + jnp.dot(lo, et, preferred_element_type=f32))

    mean = seg_sum(x) * inv_c                                # per-original-row mean
    xc = x - seg_bcast(mean)                                 # centered copy (variance only)
    var = seg_sum(xc * xc) * inv_c                           # biased variance, no cancellation
    inv = jax.lax.rsqrt(jnp.maximum(var, 0.0) + _EPS)        # garbage ragged rows stay finite-safe
    o_ref[...] = (x * seg_bcast(inv) * w_ref[...]).astype(o_ref.dtype)


def biasfree_layernorm(x, weight, *, target_tile_bytes=4 * 1024 * 1024):
    """BiasFree LayerNorm over the last axis.  x: (..., C); weight: (C,)."""
    orig_shape = x.shape
    C = int(orig_shape[-1])
    assert weight.shape == (C,)
    orig_dtype = x.dtype
    itemsize = jnp.dtype(orig_dtype).itemsize

    rows = 1
    for d in orig_shape[:-1]:
        rows *= int(d)
    x2d = x.reshape(rows, C)

    # Lane folding: fold k rows into one lane-dense row of width W = k*C
    # whenever C is not a multiple of 128 and W stays modest.
    k = 1
    if C % 128 != 0:
        cand = 128 // math.gcd(C, 128)
        if cand * C <= _MAX_FOLD_WIDTH:
            k = cand
    W = k * C

    # Pad rows only to a multiple of k (<= k-1 rows); the row grid is ragged,
    # so there is no whole-array pad to a tile multiple.
    rows_k = _round_up(rows, k)
    if rows_k != rows:
        x2d = jnp.pad(x2d, ((0, rows_k - rows), (0, 0)))
    R = rows_k // k
    xf = x2d.reshape(R, W)            # free reshape (contiguous)

    # Row-tile sizing: ~target_tile_bytes of input per step, multiple of 8
    # sublanes, conservatively bounded so double-buffered I/O + f32 temporaries
    # fit inside the 48 MiB VMEM budget (safe on v5e/v6e/v7x).
    n_tmp = 8 if k > 1 else 4
    bytes_per_row = W * (4 * itemsize + n_tmp * 4)
    vmem_rows = max(8, ((_VMEM_CAP - (4 << 20)) // bytes_per_row) // 8 * 8)
    tile = max(8, (target_tile_bytes // (W * itemsize)) // 8 * 8)
    tile = min(tile, vmem_rows, _round_up(R, 8))

    steps = pl.cdiv(R, tile)
    if steps == 1 and R > 8:                  # give both TensorCores work (v7x)
        tile = max(8, _round_up((R + 1) // 2, 8))
        steps = pl.cdiv(R, tile)
    if steps > 1 and steps % 2 == 1:          # prefer an even step count
        t2 = max(8, _round_up(pl.cdiv(R, steps + 1), 8))
        if pl.cdiv(R, t2) % 2 == 0:
            tile, steps = t2, pl.cdiv(R, t2)

    vmem_bytes = int(min(_VMEM_CAP,
                         max(32 << 20, tile * bytes_per_row + (4 << 20))))

    # Weight replicated across the k folded segments, pre-cast to f32.
    wf = jnp.tile(weight.astype(jnp.float32), k).reshape(1, W)

    x_spec = pl.BlockSpec((tile, W), lambda i: (i, 0))
    const_specs = [pl.BlockSpec((1, W), lambda i: (0, 0))]   # VMEM-resident weight
    args = [xf, wf]

    if k > 1:
        seg = jnp.arange(W, dtype=jnp.int32) // C            # lane -> segment id
        jk = jnp.arange(k, dtype=jnp.int32)
        e = (seg[:, None] == jk[None, :]).astype(jnp.bfloat16)    # (W, k) exact 0/1
        et = (jk[:, None] == seg[None, :]).astype(jnp.bfloat16)   # (k, W) transpose
        const_specs += [pl.BlockSpec((W, k), lambda i: (0, 0)),
                        pl.BlockSpec((k, W), lambda i: (0, 0))]
        args += [e, et]
        kernel = functools.partial(_ln_kernel_folded, inv_c=1.0 / C)
        mxu_flops_per_elem = 8 * 2 * 128      # 8 single bf16 passes, padded contraction/output
    else:
        kernel = functools.partial(_ln_kernel_dense, inv_c=1.0 / C)
        mxu_flops_per_elem = 0

    out = pl.pallas_call(
        kernel,
        out_shape=jax.ShapeDtypeStruct((R, W), orig_dtype),
        grid=(steps,),
        in_specs=[x_spec] + const_specs,
        out_specs=pl.BlockSpec((tile, W), lambda i: (i, 0)),
        compiler_params=pltpu.CompilerParams(
            dimension_semantics=("parallel",),
            vmem_limit_bytes=vmem_bytes,
        ),
        cost_estimate=pl.CostEstimate(
            flops=(mxu_flops_per_elem + 16) * rows * C,
            transcendentals=rows,
            bytes_accessed=2 * rows * C * itemsize,
        ),
    )(*args)

    out = out.reshape(rows_k, C)
    if rows_k != rows:
        out = out[:rows]
    return out.reshape(orig_shape)


def _reference(x, weight):
    xf = x.astype(jnp.float32)
    sigma = jnp.var(xf, axis=-1, keepdims=True)
    out = xf / jnp.sqrt(sigma + _EPS) * weight.astype(jnp.float32)
    return out.astype(x.dtype)


if __name__ == "__main__":
    key = jax.random.PRNGKey(0)
    cases = [
        # (shape, weight builder) — small shapes covering every code path.
        ((2, 64, 48),  lambda c: 0.5 + jnp.arange(c, dtype=jnp.float32) / c),  # k=8 fold, 2 steps
        ((3, 7, 32),   lambda c: jnp.ones((c,), jnp.float32)),                 # k=4, k-pad + ragged block
        ((2, 16, 128), lambda c: 0.5 + jnp.arange(c, dtype=jnp.float32) / c),  # k=1 lane-dense
        ((2, 5, 192),  lambda c: jnp.ones((c,), jnp.float32)),                 # extended fold (k=2)
        ((2, 8, 9),    lambda c: jnp.ones((c,), jnp.float32)),                 # unfolded fallback
    ]
    for i, (shape, make_w) in enumerate(cases):
        key, sub = jax.random.split(key)
        # +3.0 DC offset exercises the mean-centered (two-pass) variance path.
        xx = jax.random.normal(sub, shape, dtype=jnp.float32) + 3.0
        ww = make_w(shape[-1])
        yy = jax.block_until_ready(biasfree_layernorm(xx, ww))
        ref = _reference(xx, ww)
        assert yy.shape == xx.shape
        assert jnp.allclose(yy, ref, atol=1e-4, rtol=1e-4), f"case {i} mismatch"
    print("KERNEL_OK")
</pallas_src>

<mosaic_0001>
module attributes {stable_mosaic.version = 11 : i64} {
  func.func @_ln_kernel_folded(%arg0: i32, %arg1: memref<8x384xf32, #tpu.memory_space<vmem>>, %arg2: memref<1x384xf32, #tpu.memory_space<vmem>>, %arg3: memref<384x8xbf16, #tpu.memory_space<vmem>>, %arg4: memref<8x384xbf16, #tpu.memory_space<vmem>>, %arg5: memref<8x384xf32, #tpu.memory_space<vmem>>) attributes {dimension_semantics = [#tpu.dimension_semantics<parallel>], iteration_bounds = array<i64: 2>, scalar_prefetch = 0 : i64, scratch_operands = 0 : i64, tpu.core_type = #tpu.core_type<tc>, window_params = [{transform_indices = @transform_0, window_bounds = array<i64: 8, 384>}, {pipeline_mode = #tpu.pipeline_mode<synchronous>, transform_indices = @transform_1, window_bounds = array<i64: 1, 384>}, {pipeline_mode = #tpu.pipeline_mode<synchronous>, transform_indices = @transform_2, window_bounds = array<i64: 384, 8>}, {pipeline_mode = #tpu.pipeline_mode<synchronous>, transform_indices = @transform_3, window_bounds = array<i64: 8, 384>}, {transform_indices = @transform_4, window_bounds = array<i64: 8, 384>}]} {
    %c0 = arith.constant 0 : index
    %c0_0 = arith.constant 0 : index
    %0 = vector.load %arg1[%c0, %c0_0] : memref<8x384xf32, #tpu.memory_space<vmem>>, vector<8x384xf32>
    %c0_1 = arith.constant 0 : index
    %c0_2 = arith.constant 0 : index
    %1 = vector.load %arg3[%c0_1, %c0_2] : memref<384x8xbf16, #tpu.memory_space<vmem>>, vector<384x8xbf16>
    %c0_3 = arith.constant 0 : index
    %c0_4 = arith.constant 0 : index
    %2 = vector.load %arg4[%c0_3, %c0_4] : memref<8x384xbf16, #tpu.memory_space<vmem>>, vector<8x384xbf16>
    %3 = arith.truncf %0 : vector<8x384xf32> to vector<8x384xbf16>
    %4 = arith.extf %3 : vector<8x384xbf16> to vector<8x384xf32>
    %5 = arith.subf %0, %4 : vector<8x384xf32>
    %6 = arith.truncf %5 : vector<8x384xf32> to vector<8x384xbf16>
    %cst = arith.constant dense<0.000000e+00> : vector<8x8xf32>
    %7 = tpu.matmul %3, %1, %cst {dimension_numbers = #tpu.dot_dimension_numbers<[1], [0], [0], [1], [0, 0, 1, 1], [], []>} : vector<8x384xbf16>, vector<384x8xbf16>, vector<8x8xf32> -> vector<8x8xf32>
    %cst_5 = arith.constant dense<0.000000e+00> : vector<8x8xf32>
    %8 = tpu.matmul %6, %1, %cst_5 {dimension_numbers = #tpu.dot_dimension_numbers<[1], [0], [0], [1], [0, 0, 1, 1], [], []>} : vector<8x384xbf16>, vector<384x8xbf16>, vector<8x8xf32> -> vector<8x8xf32>
    %9 = arith.addf %7, %8 : vector<8x8xf32>
    %cst_6 = arith.constant 0.020833334 : f32
    %10 = vector.broadcast %cst_6 : f32 to vector<8x8xf32>
    %11 = arith.mulf %9, %10 : vector<8x8xf32>
    %12 = arith.truncf %11 : vector<8x8xf32> to vector<8x8xbf16>
    %13 = arith.extf %12 : vector<8x8xbf16> to vector<8x8xf32>
    %14 = arith.subf %11, %13 : vector<8x8xf32>
    %15 = arith.truncf %14 : vector<8x8xf32> to vector<8x8xbf16>
    %cst_7 = arith.constant dense<0.000000e+00> : vector<8x384xf32>
    %16 = tpu.matmul %12, %2, %cst_7 {dimension_numbers = #tpu.dot_dimension_numbers<[1], [0], [0], [1], [0, 0, 1, 1], [], []>} : vector<8x8xbf16>, vector<8x384xbf16>, vector<8x384xf32> -> vector<8x384xf32>
    %cst_8 = arith.constant dense<0.000000e+00> : vector<8x384xf32>
    %17 = tpu.matmul %15, %2, %cst_8 {dimension_numbers = #tpu.dot_dimension_numbers<[1], [0], [0], [1], [0, 0, 1, 1], [], []>} : vector<8x8xbf16>, vector<8x384xbf16>, vector<8x384xf32> -> vector<8x384xf32>
    %18 = arith.addf %16, %17 : vector<8x384xf32>
    %19 = arith.subf %0, %18 : vector<8x384xf32>
    %20 = arith.mulf %19, %19 : vector<8x384xf32>
    %21 = arith.truncf %20 : vector<8x384xf32> to vector<8x384xbf16>
    %22 = arith.extf %21 : vector<8x384xbf16> to vector<8x384xf32>
    %23 = arith.subf %20, %22 : vector<8x384xf32>
    %24 = arith.truncf %23 : vector<8x384xf32> to vector<8x384xbf16>
    %cst_9 = arith.constant dense<0.000000e+00> : vector<8x8xf32>
    %25 = tpu.matmul %21, %1, %cst_9 {dimension_numbers = #tpu.dot_dimension_numbers<[1], [0], [0], [1], [0, 0, 1, 1], [], []>} : vector<8x384xbf16>, vector<384x8xbf16>, vector<8x8xf32> -> vector<8x8xf32>
    %cst_10 = arith.constant dense<0.000000e+00> : vector<8x8xf32>
    %26 = tpu.matmul %24, %1, %cst_10 {dimension_numbers = #tpu.dot_dimension_numbers<[1], [0], [0], [1], [0, 0, 1, 1], [], []>} : vector<8x384xbf16>, vector<384x8xbf16>, vector<8x8xf32> -> vector<8x8xf32>
    %27 = arith.addf %25, %26 : vector<8x8xf32>
    %cst_11 = arith.constant 0.020833334 : f32
    %28 = vector.broadcast %cst_11 : f32 to vector<8x8xf32>
    %29 = arith.mulf %27, %28 : vector<8x8xf32>
    %cst_12 = arith.constant 0.000000e+00 : f32
    %30 = vector.broadcast %cst_12 : f32 to vector<8x8xf32>
    %31 = arith.maximumf %29, %30 : vector<8x8xf32>
    %cst_13 = arith.constant 9.99999974E-6 : f32
    %32 = vector.broadcast %cst_13 : f32 to vector<8x8xf32>
    %33 = arith.addf %31, %32 : vector<8x8xf32>
    %34 = math.rsqrt %33 : vector<8x8xf32>
    %35 = arith.truncf %34 : vector<8x8xf32> to vector<8x8xbf16>
    %36 = arith.extf %35 : vector<8x8xbf16> to vector<8x8xf32>
    %37 = arith.subf %34, %36 : vector<8x8xf32>
    %38 = arith.truncf %37 : vector<8x8xf32> to vector<8x8xbf16>
    %cst_14 = arith.constant dense<0.000000e+00> : vector<8x384xf32>
    %39 = tpu.matmul %35, %2, %cst_14 {dimension_numbers = #tpu.dot_dimension_numbers<[1], [0], [0], [1], [0, 0, 1, 1], [], []>} : vector<8x8xbf16>, vector<8x384xbf16>, vector<8x384xf32> -> vector<8x384xf32>
    %cst_15 = arith.constant dense<0.000000e+00> : vector<8x384xf32>
    %40 = tpu.matmul %38, %2, %cst_15 {dimension_numbers = #tpu.dot_dimension_numbers<[1], [0], [0], [1], [0, 0, 1, 1], [], []>} : vector<8x8xbf16>, vector<8x384xbf16>, vector<8x384xf32> -> vector<8x384xf32>
    %41 = arith.addf %39, %40 : vector<8x384xf32>
    %42 = arith.mulf %0, %41 : vector<8x384xf32>
    %c0_16 = arith.constant 0 : index
    %c0_17 = arith.constant 0 : index
    %43 = vector.load %arg2[%c0_16, %c0_17] : memref<1x384xf32, #tpu.memory_space<vmem>>, vector<1x384xf32>
    %44 = vector.broadcast %43 : vector<1x384xf32> to vector<8x384xf32>
    %45 = arith.mulf %42, %44 : vector<8x384xf32>
    %c0_18 = arith.constant 0 : index
    %c0_19 = arith.constant 0 : index
    %46 = vector.load %arg5[%c0_18, %c0_19] : memref<8x384xf32, #tpu.memory_space<vmem>>, vector<8x384xf32>
    tpu.vector_store %arg5[%c0_18, %c0_19], %45 {strides = array<i32>} : memref<8x384xf32, #tpu.memory_space<vmem>>, vector<8x384xf32>,
    return
  }
  func.func @transform_0(%arg0: i32) -> (i32, i32) {
    %c0_i32 = arith.constant 0 : i32
    %c0_i32_0 = arith.constant 0 : i32
    return %arg0, %c0_i32 : i32, i32
  }
  func.func @transform_1(%arg0: i32) -> (i32, i32) {
    %c0_i32 = arith.constant 0 : i32
    %c0_i32_0 = arith.constant 0 : i32
    %c0_i32_1 = arith.constant 0 : i32
    return %c0_i32, %c0_i32_0 : i32, i32
  }
  func.func @transform_2(%arg0: i32) -> (i32, i32) {
    %c0_i32 = arith.constant 0 : i32
    %c0_i32_0 = arith.constant 0 : i32
    %c0_i32_1 = arith.constant 0 : i32
    return %c0_i32, %c0_i32_0 : i32, i32
  }
  func.func @transform_3(%arg0: i32) -> (i32, i32) {
    %c0_i32 = arith.constant 0 : i32
    %c0_i32_0 = arith.constant 0 : i32
    %c0_i32_1 = arith.constant 0 : i32
    return %c0_i32, %c0_i32_0 : i32, i32
  }
  func.func @transform_4(%arg0: i32) -> (i32, i32) {
    %c0_i32 = arith.constant 0 : i32
    %c0_i32_0 = arith.constant 0 : i32
    return %arg0, %c0_i32 : i32, i32
  }
}

</mosaic_0001>

<bundles_post_ra>
// kernel: tpu_custom_call.1
= control target key start
LH: loop header
LB: loop body
LE: loop exit
PB: predicated region body
PF: predicated region fallthrough
CT: control target
= control target key end

     0   :  { %9 = vsyncpa [#allocation3], 0  ;;  %s2085_s0 = inlined_call_operand.vmem [shape: f32[16,384], index: 0, kind: input, shape index: {}]   ;;  %s2086_s1 = inlined_call_operand.vmem [shape: f32[1,384], index: 1, kind: input, shape index: {}]   ;;  %s2087_s2 = inlined_call_operand.vmem [shape: bf16[384,8], index: 2, kind: input, shape index: {}]   ;;  %s2088_s3 = inlined_call_operand.vmem [shape: bf16[8,384], index: 3, kind: input, shape index: {}]   ;;  %s2089_s4 = inlined_call_operand.hbm [shape: f32[16,384], index: 4, kind: output, shape index: {}]  }
   0x1   :  { %11 = vsyncpa [#allocation3 + $0x1], 0  ;;  %s1660_s15 = smov 0   ;;  %s1662_s16 = smov 0  }
   0x2   :  { %s1664_s17 = smov 0   ;;  %s1666_s18 = smov 0  }
   0x3 LB: > { %s1681_s19 = sadd.s32 4294967295, %s1629_s18   ;;  %s1212_s20 = sadd.s32 4294967294, %s1629_s18   ;;  %s1629_s18 = sphi %s1666_s18, %s2095_s18   ;;  %s1625_s17 = sphi %s1664_s17, %s2094_s17   ;;  %s1621_s16 = sphi %s1662_s16, %s2093_s16   ;;  %s1617_s15 = sphi %s1660_s15, %s2092_s15  }
   0x4   : > { %s1685_s21 = sadd.s32 1, %s1629_s18   ;;  %s113_s22 = sadd.s32 1, %s1625_s17 }
   0x5   : > { %s110_s23 = ssub.s32 %s1629_s18, %s1685_s21  ;;  %p123_p0 = scmp.ne.s32.totalorder %s1625_s17, %s1621_s16 }
   0x6   : > { %p111_p1 = scmp.eq.s32.totalorder %s110_s23, 0  ;;  %p124_p2 = scmp.eq.s32.totalorder %s1681_s19, 1 }
   0x7   : > { %p129_p3 = scmp.ne.s32.totalorder %s1621_s16, %s1617_s15  ;;  %p130_p4 = scmp.eq.s32.totalorder %s1212_s20, 1 }
   0x8   : > { %s1696_s24 = scalar_select %p111_p1, %s1625_s17, %s113_s22  }
   0x9   : > { %p1698_p5 = por %p124_p2, %p123_p0  ;;  %p1702_p6 = por %p130_p4, %p129_p3 }
   0xa   : > { %p1215_p7 = scmp.ge.s32.totalorder %s1629_s18, 1  ;;  %p165_p8 = scmp.lt.s32.totalorder %s1629_s18, 3 }
   0xc   : > { %p166_p9 = pnand %p1215_p7, %p165_p8 }
   0xd   : > { %p191_p10 = scmp.lt.s32.totalorder (!%p166_p9), %s1681_s19, 1  ;;  %s188_s7 = sand.u32 (!%p166_p9), 1, %s1621_s16  }
   0xe   : > { %169 = sbr.rel (%p166_p9) target bundleno = 996 (0x3e4), region = 36  ;;  %s1634_s27 = smov (!%p166_p9), [#allocation2]  }
   0xf   : > { %s1495_s8 = smul.u32 (!%p166_p9), 24, %s188_s7  ;;  %s1573_s28 = sshll.u32 (!%p166_p9), %s1634_s27, 4  ;;  %s1574_s28 = int_to_ptr.vmem [resolvable:$false] %s1573_s28 }
  0x10   : > { %s1575_s29 = scalar_lea.vmem (!%p166_p9), %s1574_s28, 768 }
  0x11   : > { %s190_s12 = scalar_lea.vmem (!%p166_p9), [#allocation2], %s1495_s8 }
  0x12   : > { %s1153_s13 = sshll.u32 (!%p166_p9), %s190_s12, 4  ;;  %s1154_s13 = int_to_ptr.vmem [resolvable:$true] %s1153_s13 }
  0x13   : > { %v1711_v0 = vld [vmem:[%s2087_s2 + $0x78] sm:$0xff]   ;;  %v1631_v1 = vmov 0.0   ;;  %v1729_v4 = vld [vmem:[%s2087_s2 + $0x70] sm:$0xff]   ;;  %vm1632_vm0 = vmmov 0   ;;  %v1749_v7 = vld [vmem:[%s2087_s2 + $0x68] sm:$0xff]   ;;  %s192_s10 = scalar_select %p191_p10, %s1681_s19, 1 }
  0x14   : > { %1391 = vmatprep.subr.bf16.mxu1 %v1631_v1  ;;  %v1717_v2 = vld [vmem:[%s2087_s2 + $0x38] sm:$0xff]   ;;  %1259 = vmatprep.subr.bf16.mxu0 %v1711_v0  ;;  %v1737_v5 = vld [vmem:[%s2087_s2 + $0x30] sm:$0xff]   ;;  %v1755_v8 = vld [vmem:[%s2087_s2 + $0x28] sm:$0xff]   ;;  %vm583_vm1 = vcmask 1043456   ;;  %v1633_v46 = vmov 0   ;;  %vm579_vm2 = vcmask 64512   ;;  %p1576_p0 = scmp.lt.s32.totalorder %s1154_s13, %s1574_s28 }
  0x15   : > { %v1723_v3 = vld [vmem:[%s2087_s2 + $0xb8] sm:$0xff]   ;;  %1260 = vmatpush3.bf16.msra.mxu0 %v1717_v2  ;;  %1407 = vmatprep.mubr.msk.bf16.mxu1 %vm1632_vm0, %v1631_v1  ;;  %v1744_v6 = vld [vmem:[%s2087_s2 + $0xb0] sm:$0xff]   ;;  %v1762_v9 = vld [vmem:[%s2087_s2 + $0xa8] sm:$0xff]   ;;  %s1496_s23 = smul.u32 24, %s192_s10 }
  0x16   : > { %1392 = vmatpush3.bf16.msra.mxu1 %v1723_v3  ;;  %1261 = vmatprep.subr.bf16.mxu0 %v1729_v4  ;;  %v1768_v10 = vld [vmem:[%s2087_s2 + $0x60] sm:$0xff]   ;;  %v1787_v13 = vld [vmem:[%s2087_s2 + $0x58] sm:$0xff]   ;;  %v1807_v16 = vld [vmem:[%s2087_s2 + $0x50] sm:$0xff]  }
  0x17   : > { %1393 = vmatprep.subr.bf16.mxu1 %v1631_v1  ;;  %v1774_v11 = vld [vmem:[%s2087_s2 + $0x20] sm:$0xff]   ;;  %v1794_v14 = vld [vmem:[%s2087_s2 + $0x18] sm:$0xff]   ;;  %v1813_v17 = vld [vmem:[%s2087_s2 + $0x10] sm:$0xff]   ;;  %s195_s11 = scalar_lea.vmem %s2085_s0, %s1496_s23  ;;  %s1569_s23 = scalar_lea.vmem %s1154_s13, 384 }
  0x18   : > { %v1780_v12 = vld [vmem:[%s2087_s2 + $0xa0] sm:$0xff]   ;;  %v1800_v15 = vld [vmem:[%s2087_s2 + $0x98] sm:$0xff]   ;;  %v1819_v18 = vld [vmem:[%s2087_s2 + $0x90] sm:$0xff]   ;;  %p1570_p11 = scmp.ne.s32.totalorder %s1154_s13, %s1569_s23  ;;  %p1577_p1 = scmp.lt.s32.totalorder %s1575_s29, %s1569_s23 }
  0x19   : > { %1262 = vmatpush3.bf16.msra.mxu0 %v1737_v5  ;;  %v1826_v19 = vld [vmem:[%s2087_s2 + $0x48] sm:$0xff]   ;;  %v1846_v22 = vld [vmem:[%s2087_s2 + $0x40] sm:$0xff]   ;;  %v1854_v25 = vld [vmem:[%s195_s11 + $0x10] sm:$0xff] }
  0x1a   : > { %1394 = vmatpush3.bf16.msra.mxu1 %v1744_v6  ;;  %1263 = vmatprep.subr.bf16.mxu0 %v1749_v7  ;;  %v1832_v20 = vld [vmem:[%s2087_s2 + $0x8] sm:$0xff]   ;;  %v1852_v24 = vld [vmem:[%s195_s11] sm:$0xff]  ;;  %v252_v28 = vpack.c.bf16 %v1854_v25, %v1854_v25  ;;  %p1571_p12 = pnand %p1570_p11, %p1698_p5  ;;  %p1578_p2 = por %p1577_p1, %p1576_p0 }
  0x1b   : > { %1395 = vmatprep.subr.bf16.mxu1 %v1631_v1  ;;  %v1840_v21 = vld [vmem:[%s2087_s2 + $0x88] sm:$0xff]   ;;  %v250_v27 = vpack.c.bf16 %v1852_v24, %v1852_v24  ;;  %v1867_v29 = vld [vmem:[%s2087_s2] sm:$0xff]  }
  0x1c   : > { %v1850_v23 = vld [vmem:[%s195_s11 + $0x8] sm:$0xff]  ;;  %v255_v32 = vunpack.c.l.bf16 %v252_v28  ;;  %v1874_v33 = vld [vmem:[%s2087_s2 + $0x80] sm:$0xff]   ;;  %s1497_s11 = smul.u32 384, %s1681_s19  ;;  %s1139_s19 = scalar_lea.sflag [#allocation3], %s188_s7 }
  0x1d   : > { %1264 = vmatpush3.bf16.msra.mxu0 %v1755_v8  ;;  %v251_v26 = vpack.c.bf16 %v1850_v23, %v1850_v23  ;;  %v253_v31 = vunpack.c.l.bf16 %v250_v27  ;;  %v248_v40 = vld [vmem:[%s2088_s3] sm:$0xff]  ;;  %v1566_v43 = vld [vmem:[%s2088_s3 + $0x8] ss:$0 sps:$4 sm:$0xff]   ;;  %p1572_p13 = pneg %p1571_p12 }
  0x1e   : > { %1396 = vmatpush3.bf16.msra.mxu1 %v1762_v9  ;;  %1265 = vmatprep.subr.bf16.mxu0 %v1768_v10  ;;  %v258_v36 = vsub.f32 %v1854_v25, %v255_v32  ;;  %v1922_v41 = vcombine.high %v248_v40, %v248_v40  ;;  %v1241_v42 = vcombine.low %v248_v40, %v248_v40  ;;  %v1933_v45 = vsel %vm583_vm1, %v1566_v43, 0  ;;  %s1151_s22 = scalar_lea.hbm %s2089_s4, %s1497_s11 }
  0x1f   : > { %1397 = vmatprep.subr.bf16.mxu1 %v1631_v1  ;;  %v254_v30 = vunpack.c.l.bf16 %v251_v26  ;;  %v256_v35 = vsub.f32 %v1852_v24, %v253_v31  ;;  %p1579_p3 = pnand %p1578_p2, %p1572_p13 }
  0x20   : > { %v261_v39 = vpack.c.bf16 %v258_v36, %v258_v36  ;;  %v1930_v44 = vsel %vm583_vm1, %v1241_v42, 0 }
  0x21   : > { %1266 = vmatpush3.bf16.msra.mxu0 %v1774_v11  ;;  %v257_v34 = vsub.f32 %v1850_v23, %v254_v30  ;;  %v259_v38 = vpack.c.bf16 %v256_v35, %v256_v35 }
  0x22   : > { %1398 = vmatpush3.bf16.msra.mxu1 %v1780_v12  ;;  %1267 = vmatprep.subr.bf16.mxu0 %v1787_v13 }
  0x23   : > { %1399 = vmatprep.subr.bf16.mxu1 %v1631_v1  ;;  %v260_v37 = vpack.c.bf16 %v257_v34, %v257_v34 }
  0x25   : > { %1268 = vmatpush3.bf16.msra.mxu0 %v1794_v14  ;;  %438 = vmatprep.mubr.bf16.mxu0 %v260_v37 }
  0x26   : > { %1400 = vmatpush3.bf16.msra.mxu1 %v1800_v15  ;;  %1269 = vmatprep.subr.bf16.mxu0 %v1807_v16 }
  0x27   : > { %1401 = vmatprep.subr.bf16.mxu1 %v1631_v1 }
  0x29   : > { %1270 = vmatpush3.bf16.msra.mxu0 %v1813_v17 }
  0x2a   : > { %1402 = vmatpush3.bf16.msra.mxu1 %v1819_v18  ;;  %1271 = vmatprep.subr.bf16.mxu0 %v1826_v19 }
  0x2b   : > { %1403 = vmatprep.subr.bf16.mxu1 %v1631_v1 }
  0x2d   : > { %1272 = vmatpush3.bf16.msra.mxu0 %v1832_v20 }
  0x2e   : > { %1404 = vmatpush3.bf16.msra.mxu1 %v1840_v21  ;;  %1273 = vmatprep.subr.bf16.mxu0 %v1846_v22 }
  0x2f   : > { %1405 = vmatprep.subr.bf16.mxu1 %v1631_v1 }
  0x31   : > { %1274 = vmatpush3.bf16.msra.mxu0 %v1867_v29 }
  0x32   : > { %1406 = vmatpush3.bf16.msra.mxu1 %v1874_v33  ;;  %1290 = vmatprep.subr.bf16.mxu0 %v1711_v0 }
  0x33   : > { %1411 = vmatprep.subr.bf16.mxu1 %v1631_v1 }
  0x34   : > { %439 = vmatmul.mubr.bf16.vlgmr.msra.gmra.mxu0 %v259_v38 }
  0x35   : > { %1408 = vmatmul.mubr.bf16.vlgmr.msra.gmra.mxu1 %v261_v39  ;;  %1291 = vmatpush3.bf16.msra.mxu0 %v1717_v2 }
  0x36   : > { %1412 = vmatpush3.bf16.msra.mxu1 %v1723_v3  ;;  %1292 = vmatprep.subr.bf16.mxu0 %v1729_v4 }
  0x37   : > { %1413 = vmatprep.subr.bf16.mxu1 %v1631_v1  ;;  %518 = vmatprep.mubr.bf16.mxu0 %v251_v26 }
  0x38   : > { %1427 = vmatprep.mubr.msk.bf16.mxu1 %vm1632_vm0, %v1631_v1 }
  0x39   : > { %1293 = vmatpush3.bf16.msra.mxu0 %v1737_v5 }
  0x3a   : > { %1414 = vmatpush3.bf16.msra.mxu1 %v1744_v6  ;;  %1294 = vmatprep.subr.bf16.mxu0 %v1749_v7 }
  0x3b   : > { %1415 = vmatprep.subr.bf16.mxu1 %v1631_v1 }
  0x3d   : > { %1295 = vmatpush3.bf16.msra.mxu0 %v1755_v8 }
  0x3e   : > { %1416 = vmatpush3.bf16.msra.mxu1 %v1762_v9  ;;  %1296 = vmatprep.subr.bf16.mxu0 %v1768_v10 }
  0x3f   : > { %1417 = vmatprep.subr.bf16.mxu1 %v1631_v1 }
  0x41   : > { %1297 = vmatpush3.bf16.msra.mxu0 %v1774_v11 }
  0x42   : > { %1418 = vmatpush3.bf16.msra.mxu1 %v1780_v12  ;;  %1298 = vmatprep.subr.bf16.mxu0 %v1787_v13 }
  0x43   : > { %1419 = vmatprep.subr.bf16.mxu1 %v1631_v1 }
  0x45   : > { %1299 = vmatpush3.bf16.msra.mxu0 %v1794_v14 }
  0x46   : > { %1420 = vmatpush3.bf16.msra.mxu1 %v1800_v15  ;;  %1300 = vmatprep.subr.bf16.mxu0 %v1807_v16 }
  0x47   : > { %1421 = vmatprep.subr.bf16.mxu1 %v1631_v1 }
  0x49   : > { %1301 = vmatpush3.bf16.msra.mxu0 %v1813_v17 }
  0x4a   : > { %1422 = vmatpush3.bf16.msra.mxu1 %v1819_v18  ;;  %1302 = vmatprep.subr.bf16.mxu0 %v1826_v19 }
  0x4b   : > { %1423 = vmatprep.subr.bf16.mxu1 %v1631_v1 }
  0x4d   : > { %1303 = vmatpush3.bf16.msra.mxu0 %v1832_v20 }
  0x4e   : > { %1424 = vmatpush3.bf16.msra.mxu1 %v1840_v21  ;;  %1304 = vmatprep.subr.bf16.mxu0 %v1846_v22 }
  0x4f   : > { %1425 = vmatprep.subr.bf16.mxu1 %v1631_v1 }
  0x51   : > { %1305 = vmatpush3.bf16.msra.mxu0 %v1867_v29 }
  0x52   : > { %1426 = vmatpush3.bf16.msra.mxu1 %v1874_v33  ;;  %1244 = vmatprep.subr.msk.bf16.mxu0 %vm583_vm1, %v1922_v41 }
  0x53   : > { %1431 = vmatprep.subr.bf16.mxu1 %v1631_v1 }
  0x54   : > { %519 = vmatmul.mubr.bf16.vlgmr.msra.gmra.mxu0 %v250_v27 }
  0x55   : > { %1428 = vmatmul.mubr.bf16.vlgmr.msra.gmra.mxu1 %v252_v28  ;;  %608 = vmatpush1.bf16.msra.mxu0 %v1930_v44 }
  0x56   : > { %1433 = vmatprep.mubr.msk.bf16.mxu1 %vm1632_vm0, %v1631_v1  ;;  %1432 = vmatpush3.bf16.msra.mxu1 %v1933_v45 }
  0x57   : > { %625 = vmatprep.mubr.bf16.mxu0 %v1633_v46  ;;  %1247 = vmatprep.subr.msk.bf16.mxu0 %vm583_vm1, %v1922_v41 }
  0x58   : > { %1437 = vmatprep.subr.bf16.mxu1 %v1631_v1 }
  0xf4   : > { %v1275_v47 = vpop.f32.mrf.mxu0 }
  0xf5   : > { %v480_v48 = vpop.f32.mrf.mxu1 }
  0xf6   : > { %v1276_v49 = vpop.f32.mrf.mxu0 }
  0xf7   : > { %v1409_v50 = vpop.f32.mrf.mxu1  ;;  %v1277_v55 = vadd.f32 %v1276_v49, %v1275_v47 }
  0xf8   : > { %v1278_v51 = vpop.f32.mrf.mxu0 }
  0xf9   : > { %v483_v52 = vpop.f32.mrf.mxu1  ;;  %v481_v59 = vadd.f32 %v1277_v55, %v480_v48 }
  0xfa   : > { %v1279_v53 = vpop.f32.mrf.mxu0 }
  0xfb   : > { %v1410_v54 = vpop.f32.mrf.mxu1 }
 0x114   : > { %v1306_v56 = vpop.f32.mrf.mxu0 }
 0x115   : > { %v560_v57 = vpop.f32.mrf.mxu1 }
 0x116   : > { %v1307_v58 = vpop.f32.mrf.mxu0 }
 0x117   : > { %v1308_v60 = vadd.f32 %v1307_v58, %v1306_v56  ;;  %v1429_v61 = vpop.f32.mrf.mxu1 }
 0x118   : > { %v1309_v62 = vpop.f32.mrf.mxu0 }
 0x119   : > { %v521_v63 = vadd.f32 %v1308_v60, %v481_v59  ;;  %v563_v26 = vpop.f32.mrf.mxu1 }
 0x11a   : > { %v1310_v27 = vpop.f32.mrf.mxu0 }
 0x11b   : > { %v561_v28 = vadd.f32 %v560_v57, %v521_v63  ;;  %v1430_v30 = vpop.f32.mrf.mxu1 }
 0x11d   : > { %v566_v31 = vmul.f32 0.020833334, %v561_v28 }
 0x11f   : > { %v567_v32 = vpack.c.bf16 %v566_v31, %v566_v31 }
 0x121   : > { %v568_v34 = vunpack.c.l.bf16 %v567_v32 }
 0x123   : > { %v569_v35 = vsub.f32 %v566_v31, %v568_v34 }
 0x125   : > { %v570_v36 = vpack.c.bf16 %v569_v35, %v569_v35 }
 0x127   : > { %1245 = vmatmul.mubr.msk.bf16.vlgmr.msra.gmra.mxu0 %vm579_vm2, %v570_v36  ;;  %1434 = vmatmul.mubr.msk.bf16.vlgmr.msra.gmra.mxu1 %vm579_vm2, %v570_v36 }
 0x128   : > { %692 = vmatpush1.bf16.msra.mxu0 %v1930_v44  ;;  %1438 = vmatpush3.bf16.msra.mxu1 %v1933_v45 }
 0x129   : > { %709 = vmatprep.mubr.bf16.mxu0 %v1633_v46  ;;  %1439 = vmatprep.mubr.msk.bf16.mxu1 %vm1632_vm0, %v1631_v1 }
 0x12a   : > { %1443 = vmatprep.subr.bf16.mxu1 %v1631_v1  ;;  %1325 = vmatprep.subr.bf16.mxu0 %v1711_v0 }
 0x12f   : > { %1248 = vmatmul.mubr.msk.bf16.vlgmr.msra.gmra.mxu0 %vm579_vm2, %v567_v32  ;;  %1440 = vmatmul.mubr.msk.bf16.vlgmr.msra.gmra.mxu1 %vm579_vm2, %v567_v32 }
 0x130   : > { %1444 = vmatpush3.bf16.msra.mxu1 %v1723_v3  ;;  %1326 = vmatpush3.bf16.msra.mxu0 %v1717_v2 }
 0x131   : > { %1445 = vmatprep.subr.bf16.mxu1 %v1631_v1  ;;  %1327 = vmatprep.subr.bf16.mxu0 %v1729_v4 }
 0x132   : > { %1459 = vmatprep.mubr.msk.bf16.mxu1 %vm1632_vm0, %v1631_v1 }
 0x134   : > { %1446 = vmatpush3.bf16.msra.mxu1 %v1744_v6  ;;  %1328 = vmatpush3.bf16.msra.mxu0 %v1737_v5 }
 0x135   : > { %1447 = vmatprep.subr.bf16.mxu1 %v1631_v1  ;;  %1329 = vmatprep.subr.bf16.mxu0 %v1749_v7 }
 0x138   : > { %1448 = vmatpush3.bf16.msra.mxu1 %v1762_v9  ;;  %1330 = vmatpush3.bf16.msra.mxu0 %v1755_v8 }
 0x139   : > { %1449 = vmatprep.subr.bf16.mxu1 %v1631_v1  ;;  %1331 = vmatprep.subr.bf16.mxu0 %v1768_v10 }
 0x13c   : > { %1450 = vmatpush3.bf16.msra.mxu1 %v1780_v12  ;;  %1332 = vmatpush3.bf16.msra.mxu0 %v1774_v11 }
 0x13d   : > { %1451 = vmatprep.subr.bf16.mxu1 %v1631_v1  ;;  %1333 = vmatprep.subr.bf16.mxu0 %v1787_v13 }
 0x140   : > { %1452 = vmatpush3.bf16.msra.mxu1 %v1800_v15  ;;  %1334 = vmatpush3.bf16.msra.mxu0 %v1794_v14 }
 0x141   : > { %1453 = vmatprep.subr.bf16.mxu1 %v1631_v1  ;;  %1335 = vmatprep.subr.bf16.mxu0 %v1807_v16 }
 0x144   : > { %1454 = vmatpush3.bf16.msra.mxu1 %v1819_v18  ;;  %1336 = vmatpush3.bf16.msra.mxu0 %v1813_v17 }
 0x145   : > { %1455 = vmatprep.subr.bf16.mxu1 %v1631_v1  ;;  %1337 = vmatprep.subr.bf16.mxu0 %v1826_v19 }
 0x148   : > { %1456 = vmatpush3.bf16.msra.mxu1 %v1840_v21  ;;  %1338 = vmatpush3.bf16.msra.mxu0 %v1832_v20 }
 0x149   : > { %1457 = vmatprep.subr.bf16.mxu1 %v1631_v1  ;;  %1339 = vmatprep.subr.bf16.mxu0 %v1846_v22 }
 0x14c   : > { %1458 = vmatpush3.bf16.msra.mxu1 %v1874_v33  ;;  %1340 = vmatpush3.bf16.msra.mxu0 %v1867_v29 }
 0x14d   : > { %1463 = vmatprep.subr.bf16.mxu1 %v1631_v1  ;;  %1356 = vmatprep.subr.bf16.mxu0 %v1711_v0 }
 0x1e7   : > { %v627_v37 = vpop.f32.mrf.mxu0  ;;  %v668_v38 = vpop.f32.mrf.mxu1 }
 0x1e9   : > { %v629_v39 = vpop.f32.mrf.mxu0  ;;  %v1435_v40 = vpop.f32.mrf.mxu1 }
 0x1eb   : > { %v631_v42 = vpop.f32.mrf.mxu0  ;;  %v671_v43 = vpop.f32.mrf.mxu1 }
 0x1ed   : > { %v632_v47 = vpop.f32.mrf.mxu0  ;;  %v1436_v48 = vpop.f32.mrf.mxu1 }
 0x1ef   : > { %v711_v49 = vpop.f32.mrf.mxu0  ;;  %v752_v50 = vpop.f32.mrf.mxu1 }
 0x1f0   : > { %v712_v51 = vadd.f32 %v711_v49, %v627_v37  ;;  %v753_v52 = vadd.f32 %v752_v50, %v668_v38  ;;  %v1117_v50 = vlaneseq }
 0x1f1   : > { %v713_v53 = vpop.f32.mrf.mxu0  ;;  %v1441_v54 = vpop.f32.mrf.mxu1 }
 0x1f2   : > { %v758_v55 = vsub.f32 %v1852_v24, %v712_v51  ;;  %v760_v56 = vsub.f32 %v1854_v25, %v753_v52  ;;  %v714_v57 = vadd.f32 %v713_v53, %v629_v39  ;;  %v1118_v53 = vshrl.u32 %v1117_v50, 7 }
 0x1f3   : > { %v715_v0 = vpop.f32.mrf.mxu0  ;;  %v755_v58 = vpop.f32.mrf.mxu1 }
 0x1f4   : > { %v761_v59 = vmul.f32 %v758_v55, %v758_v55  ;;  %v763_v60 = vmul.f32 %v760_v56, %v760_v56  ;;  %v759_v61 = vsub.f32 %v1850_v23, %v714_v57  ;;  %v1115_v0 = vld [vmem:[%s2086_s1] sm:$0x7]  ;;  %v1123_v58 = vsub.s32 1, %v1118_v53 }
 0x1f5   : > { %v716_v62 = vpop.f32.mrf.mxu0  ;;  %v1442_v63 = vpop.f32.mrf.mxu1 }
 0x1f6   : > { %v764_v26 = vpack.c.bf16 %v761_v59, %v761_v59  ;;  %v766_v27 = vpack.c.bf16 %v763_v60, %v763_v60  ;;  %v762_v28 = vmul.f32 %v759_v61, %v759_v61 }
 0x1f8   : > { %v767_v30 = vunpack.c.l.bf16 %v764_v26  ;;  %v769_v31 = vunpack.c.l.bf16 %v766_v27  ;;  %v765_v32 = vpack.c.bf16 %v762_v28, %v762_v28 }
 0x1fa   : > { %v772_v34 = vsub.f32 %v763_v60, %v769_v31  ;;  %v768_v35 = vunpack.c.l.bf16 %v765_v32  ;;  %v770_v36 = vsub.f32 %v761_v59, %v767_v30 }
 0x1fc   : > { %v775_v37 = vpack.c.bf16 %v772_v34, %v772_v34  ;;  %v771_v38 = vsub.f32 %v762_v28, %v768_v35  ;;  %v773_v40 = vpack.c.bf16 %v770_v36, %v770_v36  ;;  %v1124_v34 = vrot.slane %v1115_v0, %v1123_v58 }
 0x1fe   : > { %1460 = vmatmul.mubr.bf16.vlgmr.msra.gmra.mxu1 %v775_v37  ;;  %v774_v39 = vpack.c.bf16 %v771_v38, %v771_v38 }
 0x1ff   : > { %1464 = vmatpush3.bf16.msra.mxu1 %v1723_v3  ;;  %1479 = vmatprep.mubr.msk.bf16.mxu1 %vm1632_vm0, %v1631_v1 }
 0x200   : > { %808 = vmatprep.mubr.bf16.mxu0 %v774_v39  ;;  %1465 = vmatprep.subr.bf16.mxu1 %v1631_v1 }
 0x201   : > { %809 = vmatmul.mubr.bf16.vlgmr.msra.gmra.mxu0 %v773_v40 }
 0x202   : > { %1357 = vmatpush3.bf16.msra.mxu0 %v1717_v2  ;;  %888 = vmatprep.mubr.bf16.mxu0 %v765_v32 }
 0x203   : > { %1466 = vmatpush3.bf16.msra.mxu1 %v1744_v6  ;;  %1358 = vmatprep.subr.bf16.mxu0 %v1729_v4 }
 0x204   : > { %1467 = vmatprep.subr.bf16.mxu1 %v1631_v1 }
 0x206   : > { %1359 = vmatpush3.bf16.msra.mxu0 %v1737_v5 }
 0x207   : > { %1468 = vmatpush3.bf16.msra.mxu1 %v1762_v9  ;;  %1360 = vmatprep.subr.bf16.mxu0 %v1749_v7 }
 0x208   : > { %1469 = vmatprep.subr.bf16.mxu1 %v1631_v1 }
 0x20a   : > { %1361 = vmatpush3.bf16.msra.mxu0 %v1755_v8 }
 0x20b   : > { %1470 = vmatpush3.bf16.msra.mxu1 %v1780_v12  ;;  %1362 = vmatprep.subr.bf16.mxu0 %v1768_v10 }
 0x20c   : > { %1471 = vmatprep.subr.bf16.mxu1 %v1631_v1 }
 0x20e   : > { %1363 = vmatpush3.bf16.msra.mxu0 %v1774_v11 }
 0x20f   : > { %1472 = vmatpush3.bf16.msra.mxu1 %v1800_v15  ;;  %1364 = vmatprep.subr.bf16.mxu0 %v1787_v13 }
 0x210   : > { %1473 = vmatprep.subr.bf16.mxu1 %v1631_v1 }
 0x212   : > { %1365 = vmatpush3.bf16.msra.mxu0 %v1794_v14 }
 0x213   : > { %1474 = vmatpush3.bf16.msra.mxu1 %v1819_v18  ;;  %1366 = vmatprep.subr.bf16.mxu0 %v1807_v16 }
 0x214   : > { %1475 = vmatprep.subr.bf16.mxu1 %v1631_v1 }
 0x216   : > { %1367 = vmatpush3.bf16.msra.mxu0 %v1813_v17 }
 0x217   : > { %1476 = vmatpush3.bf16.msra.mxu1 %v1840_v21  ;;  %1368 = vmatprep.subr.bf16.mxu0 %v1826_v19 }
 0x218   : > { %1477 = vmatprep.subr.bf16.mxu1 %v1631_v1 }
 0x21a   : > { %1369 = vmatpush3.bf16.msra.mxu0 %v1832_v20 }
 0x21b   : > { %1478 = vmatpush3.bf16.msra.mxu1 %v1874_v33  ;;  %1370 = vmatprep.subr.bf16.mxu0 %v1846_v22 }
 0x21c   : > { %1483 = vmatprep.subr.bf16.mxu1 %v1631_v1 }
 0x21e   : > { %1371 = vmatpush3.bf16.msra.mxu0 %v1867_v29  ;;  %1480 = vmatmul.mubr.bf16.vlgmr.msra.gmra.mxu1 %v766_v27 }
 0x21f   : > { %1250 = vmatprep.subr.msk.bf16.mxu0 %vm583_vm1, %v1922_v41  ;;  %1484 = vmatpush3.bf16.msra.mxu1 %v1933_v45 }
 0x220   : > { %1485 = vmatprep.mubr.msk.bf16.mxu1 %vm1632_vm0, %v1631_v1  ;;  %1489 = vmatprep.subr.bf16.mxu1 %v1631_v1 }
 0x221   : > { %889 = vmatmul.mubr.bf16.vlgmr.msra.gmra.mxu0 %v764_v26 }
 0x222   : > { %962 = vmatpush1.bf16.msra.mxu0 %v1930_v44  ;;  %979 = vmatprep.mubr.bf16.mxu0 %v1633_v46 }
 0x223   : > { %1253 = vmatprep.subr.msk.bf16.mxu0 %vm583_vm1, %v1922_v41 }
 0x2be   : > { %v850_v2 = vpop.f32.mrf.mxu1 }
 0x2c0   : > { %v1461_v3 = vpop.f32.mrf.mxu1 }
 0x2c1   : > { %v1341_v4 = vpop.f32.mrf.mxu0 }
 0x2c2   : > { %v853_v5 = vpop.f32.mrf.mxu1 }
 0x2c3   : > { %v1342_v6 = vpop.f32.mrf.mxu0 }
 0x2c4   : > { %v1462_v7 = vpop.f32.mrf.mxu1  ;;  %v1343_v11 = vadd.f32 %v1342_v6, %v1341_v4 }
 0x2c5   : > { %v1344_v8 = vpop.f32.mrf.mxu0 }
 0x2c6   : > { %v851_v16 = vadd.f32 %v1343_v11, %v850_v2 }
 0x2c7   : > { %v1345_v9 = vpop.f32.mrf.mxu0 }
 0x2de   : > { %v930_v10 = vpop.f32.mrf.mxu1 }
 0x2e0   : > { %v1481_v12 = vpop.f32.mrf.mxu1 }
 0x2e1   : > { %v1372_v13 = vpop.f32.mrf.mxu0 }
 0x2e2   : > { %v933_v14 = vpop.f32.mrf.mxu1 }
 0x2e3   : > { %v1373_v15 = vpop.f32.mrf.mxu0 }
 0x2e4   : > { %v1374_v17 = vadd.f32 %v1373_v15, %v1372_v13  ;;  %v1482_v18 = vpop.f32.mrf.mxu1 }
 0x2e5   : > { %v1375_v19 = vpop.f32.mrf.mxu0 }
 0x2e6   : > { %v891_v20 = vadd.f32 %v1374_v17, %v851_v16 }
 0x2e7   : > { %v1376_v21 = vpop.f32.mrf.mxu0 }
 0x2e8   : > { %v931_v22 = vadd.f32 %v930_v10, %v891_v20 }
 0x2ea   : > { %v936_v29 = vmul.f32 0.020833334, %v931_v22 }
 0x2ec   : > { %v937_v33 = vmax.f32 %v936_v29, 0.0 }
 0x2ee   : > { %v938_v41 = vadd.f32 1e-05, %v937_v33 }
 0x2f0   : > { %1567 = vrsqrt.f32 %v938_v41 }
 0x2fd   : > { %v1568_v42 = vpop.eup %1567 }
 0x2fe   : > { %v940_v43 = vpack.c.bf16 %v1568_v42, %v1568_v42 }
 0x300   : > { %v941_v47 = vunpack.c.l.bf16 %v940_v43 }
 0x302   : > { %v942_v48 = vsub.f32 %v1568_v42, %v941_v47 }
 0x304   : > { %v943_v49 = vpack.c.bf16 %v942_v48, %v942_v48 }
 0x306   : > { %1251 = vmatmul.mubr.msk.bf16.vlgmr.msra.gmra.mxu0 %vm579_vm2, %v943_v49  ;;  %1486 = vmatmul.mubr.msk.bf16.vlgmr.msra.gmra.mxu1 %vm579_vm2, %v943_v49 }
 0x307   : > { %1046 = vmatpush1.bf16.msra.mxu0 %v1930_v44  ;;  %1490 = vmatpush3.bf16.msra.mxu1 %v1933_v45  ;;  %v1119_v45 = vsub.s32 0, %v1118_v53 }
 0x308   : > { %1063 = vmatprep.mubr.bf16.mxu0 %v1633_v46  ;;  %1491 = vmatprep.mubr.msk.bf16.mxu1 %vm1632_vm0, %v1631_v1  ;;  %v1127_v46 = vsub.s32 2, %v1118_v53 }
 0x309   : > { %v1120_v62 = vrot.slane %v1115_v0, %v1119_v45 }
 0x30a   : > { %v1128_v26 = vrot.slane %v1115_v0, %v1127_v46 }
 0x30e   : > { %1254 = vmatmul.mubr.msk.bf16.vlgmr.msra.gmra.mxu0 %vm579_vm2, %v940_v43  ;;  %1492 = vmatmul.mubr.msk.bf16.vlgmr.msra.gmra.mxu1 %vm579_vm2, %v940_v43 }
 0x3c6   : > { %v981_v51 = vpop.f32.mrf.mxu0  ;;  %v1022_v52 = vpop.f32.mrf.mxu1 }
 0x3c8   : > { %v983_v54 = vpop.f32.mrf.mxu0  ;;  %v1487_v55 = vpop.f32.mrf.mxu1 }
 0x3ca   : > { %v985_v56 = vpop.f32.mrf.mxu0  ;;  %v1025_v44 = vpop.f32.mrf.mxu1 }
 0x3cc   : > { %v986_v57 = vpop.f32.mrf.mxu0  ;;  %v1488_v1 = vpop.f32.mrf.mxu1 }
 0x3ce   : > { %v1065_v59 = vpop.f32.mrf.mxu0  ;;  %v1106_v60 = vpop.f32.mrf.mxu1 }
 0x3cf   : > { %v1066_v61 = vadd.f32 %v1065_v59, %v981_v51  ;;  %v1107_v63 = vadd.f32 %v1106_v60, %v1022_v52 }
 0x3d0   : > { %v1067_v27 = vpop.f32.mrf.mxu0  ;;  %v1493_v28 = vpop.f32.mrf.mxu1 }
 0x3d1   : > { %v1112_v30 = vmul.f32 %v1066_v61, %v1852_v24  ;;  %v1114_v31 = vmul.f32 %v1107_v63, %v1854_v25  ;;  %v1068_v32 = vadd.f32 %v1067_v27, %v983_v54 }
 0x3d2   : > { %v1069_v35 = vpop.f32.mrf.mxu0  ;;  %v1109_v36 = vpop.f32.mrf.mxu1 }
 0x3d3   : > { %v1132_v37 = vmul.f32 %v1120_v62, %v1112_v30  ;;  %v1134_v38 = vmul.f32 %v1128_v26, %v1114_v31  ;;  %v1113_v39 = vmul.f32 %v1068_v32, %v1850_v23 }
 0x3d4   : > { %v1070_v40 = vpop.f32.mrf.mxu0  ;;  %v1494_v2 = vpop.f32.mrf.mxu1 }
 0x3d5   : > { %1135 = vst [vmem:[%s190_s12] sm:$0xff] %v1132_v37  ;;  %1137 = vst [vmem:[%s190_s12 + $0x10] sm:$0xff] %v1134_v38  ;;  %v1133_v24 = vmul.f32 %v1124_v34, %v1113_v39 }
 0x3d7   : > { %1136 = vst [vmem:[%s190_s12 + $0x8] sm:$0xff] %v1133_v24 }
 0x3d8   : > { %1582 = shalt.err (!%p1579_p3)
}
 0x3d9   : > { %s1583_s30 = scalar_lea.hbm %s1151_s22, 384  ;;  %s1587_s7 = scalar_lea.hbm %s2089_s4, 768 }
 0x3da   : > { %p1584_p4 = scmp.ne.s32.totalorder %s1151_s22, %s1583_s30  ;;  %p1588_p9 = scmp.lt.s32.totalorder %s1151_s22, %s2089_s4 }
 0x3db   : > { %p1589_p10 = scmp.lt.s32.totalorder %s1587_s7, %s1583_s30 }
 0x3dc   : > { %p1585_p7 = pnand %p1584_p4, %p1698_p5 }
 0x3dd   : > { %p1590_p11 = por %p1589_p10, %p1588_p9 }
 0x3de   : > { %p1586_p8 = pneg %p1585_p7 }
 0x3e0   : > { %p1591_p12 = pnand %p1590_p11, %p1586_p8 }
 0x3e2   : > { %1594 = shalt.err (!%p1591_p12)
}
 0x3e3   : > { %1498 = dma.vmem_to_hbm [thread:$0]  (%p1698_p5), %s1154_s13, 384, %s1151_s22, %s1139_s19  }
 0x3e4 PF: > { %p1504_p13 = scmp.ge.s32.totalorder %s1629_s18, 2  ;;  %s1165_s10 = sand.u32 1, %s1617_s15  }
 0x3e5   : > { %s1166_s11 = scalar_lea.sflag [#allocation3], %s1165_s10 }
 0x3e6   : > { %p1501_p0 = pnand %p1504_p13, %p1702_p6 }
 0x3e8   : > { %p1502_p1 = pneg %p1501_p0 }
 0x3ea   : > { %1612 = dma.done.wait (%p1502_p1), %s1166_s11, 384  }
 0x3eb   : > { %1614 = vsyncadd (%p1502_p1), %s1166_s11, 4294966912  ;;  %p14_p2 = scmp.ge.s32.totalorder %s1685_s21, 4   ;;  %s2092_s15 = smov %s1621_s16 }
 0x3ec   : > { %s2093_s16 = smov %s1625_s17  ;;  %s2094_s17 = smov %s1696_s24 }
 0x3ed   : > { %s2095_s18 = smov %s1685_s21  ;;  %16 = sbr.rel (!%p14_p2) target bundleno = 3 (0x3), region = 71 }
 0x3f2   :  { %1171 = vsyncpa [#allocation3], 1 }
 0x3f3   :  { %1173 = vsyncpa [#allocation3 + $0x1], 1 }

</bundles_post_ra>
